<compile_context>
chip_gen: v6e
topology: v6e:2x2x1
jax: 0.10.0
libtpu: 0.0.40
codegen_flags: <defaults>
</compile_context>

<pallas_src>
import functools
import math

import numpy as np

import jax
import jax.numpy as jnp
from jax.experimental import pallas as pl
from jax.experimental.pallas import tpu as pltpu


def _round_up(n: int, m: int) -> int:
    return ((n + m - 1) // m) * m


def _interp_matmul_kernel(x_ref, m_ref, o_ref):
    # x_ref: (TR, W) rows in the compute dtype; m_ref: (W, TN) interp-matrix
    # tile in the same compute dtype.  MXU matmul, f32 accumulation.
    o_ref[...] = jnp.dot(
        x_ref[...], m_ref[...], preferred_element_type=jnp.float32
    ).astype(o_ref.dtype)


@functools.lru_cache(maxsize=64)
def _interp_matrix(w_in: int, w_out: int, w_pad: int, dtype_name: str):
    """PyTorch bilinear (align_corners=False, recompute_scale_factor=True)
    interpolation matrix along W, built once on the host and cached.

    Returns a (w_in, w_pad) device array whose first w_out columns hold the
    2-tap interpolation weights; remaining columns are zero.
    """
    j = np.arange(w_out, dtype=np.float32)
    src = (j + np.float32(0.5)) * np.float32(float(w_in) / float(w_out)) - np.float32(0.5)
    src = np.maximum(src, np.float32(0.0))        # PyTorch clamps negative src to 0
    i0 = np.minimum(np.floor(src).astype(np.int64), w_in - 1)
    i1 = np.minimum(i0 + 1, w_in - 1)
    lam1 = (src - i0.astype(np.float32)).astype(np.float32)
    lam0 = np.float32(1.0) - lam1
    m = np.zeros((w_in, w_pad), np.float32)
    cols = np.arange(w_out)
    np.add.at(m, (i0, cols), lam0)
    np.add.at(m, (i1, cols), lam1)
    return jnp.asarray(m, dtype=dtype_name)


def time_strech(x: jnp.ndarray, scale: float) -> jnp.ndarray:
    """Pallas implementation of TimeStrech.forward for NCHW input x."""
    b, c, h, w = x.shape
    w_out = int(math.floor(w * scale))            # recompute_scale_factor=True
    r = b * c * h

    out_dtype = x.dtype
    # bf16 stays bf16 on the MXU (f32 accumulation); everything else runs f32.
    compute_dtype = jnp.bfloat16 if x.dtype == jnp.bfloat16 else jnp.float32
    cdtype_name = jnp.dtype(compute_dtype).name
    rows = x.reshape(r, w)                        # free reshape
    if rows.dtype != compute_dtype:
        rows = rows.astype(compute_dtype)

    # Sub-vreg problems: Pallas launch/pipeline overhead dominates and a
    # <128-wide output forces fully masked stores; one XLA fusion is faster.
    if r < 8 or w_out < 128:
        m_small = _interp_matrix(w, w_out, w_out, cdtype_name)
        out = jnp.dot(rows, m_small, preferred_element_type=jnp.float32)
        out = out.astype(out_dtype).reshape(b, c, h, w_out)
        return jnp.expand_dims(jnp.squeeze(out), 1)

    # --- tiling ---------------------------------------------------------
    itemsize = jnp.dtype(compute_dtype).itemsize
    out_itemsize = jnp.dtype(out_dtype).itemsize
    w_pad128 = _round_up(w_out, 128)
    r8 = _round_up(r, 8)

    # Chip-derived VMEM budget (v7x: 64 MiB/TC; v5e/v6e: 128 MiB).
    try:
        vmem_cap = int(pltpu.get_tpu_info().vmem_capacity_bytes)
    except Exception:  # pragma: no cover - conservative fallback
        vmem_cap = 64 << 20
    budget = int(vmem_cap * 0.40)                 # double-buffered working set

    def working_set(tr_, tn_):
        # double-buffered: row tile + matrix tile + output tile
        return 2 * ((tr_ * w + w * tn_) * itemsize + tr_ * tn_ * out_itemsize)

    # N (output-column) tile, multiple of 128.  Prefer a single block so the
    # matrix stays fully resident and rows stream from HBM exactly once.
    tn = w_pad128
    if working_set(8, tn) > budget:
        tn = min(512, w_pad128)
        while tn > 128 and working_set(8, tn) > budget:
            tn //= 2
    wp = _round_up(w_out, tn)                     # zero-padded matrix width
    n_n = wp // tn

    # Row tile: as big as the VMEM budget allows (multiple of 8, <= 1024).
    tr = max(8, (min(1024, r8) // 8) * 8)
    while tr > 8 and working_set(tr, tn) > budget:
        tr = max(8, _round_up(tr // 2, 8))
    n_r = pl.cdiv(r, tr)

    vmem_limit = int(min(int(vmem_cap * 0.75),
                         max(2 * working_set(tr, tn) + (2 << 20), 16 << 20)))

    m = _interp_matrix(w, w_out, wp, cdtype_name)  # (W, WP), host-built + cached

    cost = pl.CostEstimate(
        flops=2 * r * w * wp,
        transcendentals=0,
        bytes_accessed=r * w * itemsize + w * wp * itemsize + r * w_out * out_itemsize,
    )

    if n_n == 1:
        # Matrix fully resident; 1-D parallel grid over rows.  Rows are read
        # from HBM exactly once, and v7x megacore gets a >1-extent axis.
        grid = (n_r,)
        in_specs = [
            pl.BlockSpec((tr, w), lambda i: (i, 0)),
            pl.BlockSpec((w, tn), lambda i: (0, 0)),   # constant block -> no re-DMA
        ]
        out_specs = pl.BlockSpec((tr, tn), lambda i: (i, 0))
        dims = ("parallel",)
    else:
        # Column tiles outermost so the matrix tile stays resident across the
        # inner row sweep; leading axis extent >= 2 for megacore sharding.
        grid = (n_n, n_r)
        in_specs = [
            pl.BlockSpec((tr, w), lambda j, i: (i, 0)),
            pl.BlockSpec((w, tn), lambda j, i: (0, j)),
        ]
        out_specs = pl.BlockSpec((tr, tn), lambda j, i: (i, j))
        dims = ("parallel", "parallel")

    out = pl.pallas_call(
        _interp_matmul_kernel,
        out_shape=jax.ShapeDtypeStruct((r, w_out), out_dtype),  # no post-slice copy
        grid=grid,
        in_specs=in_specs,
        out_specs=out_specs,
        compiler_params=pltpu.CompilerParams(
            dimension_semantics=dims,
            vmem_limit_bytes=vmem_limit,
        ),
        cost_estimate=cost,
    )(rows, m)

    out = out.reshape(b, c, h, w_out)
    # .squeeze() then .unsqueeze(1), exactly like the PyTorch module (inherited
    # quirk: output rank changes when B == 1 and/or C == 1).
    return jnp.expand_dims(jnp.squeeze(out), 1)


def _reference(x: jnp.ndarray, scale: float) -> jnp.ndarray:
    """Pure-JAX reference of the same semantics (for a sanity check)."""
    b, c, h, w = x.shape
    w_out = int(math.floor(w * scale))
    m = _interp_matrix(w, w_out, w_out, "float32")
    out = jnp.einsum("bchw,wo->bcho", x.astype(jnp.float32), m).astype(x.dtype)
    return jnp.expand_dims(jnp.squeeze(out), 1)


if __name__ == "__main__":
    key = jax.random.PRNGKey(0)
    # Mel-spectrogram style input: (batch=2, channels=1, n_mels=80, frames=192)
    x = jax.random.normal(key, (2, 1, 80, 192), dtype=jnp.float32)
    scale = 1.5  # TimeStrech(scale=1.5) -> W_out = 288

    y = time_strech(x, scale)
    y = jax.block_until_ready(y)

    y_ref = _reference(x, scale)
    assert y.shape == y_ref.shape, (y.shape, y_ref.shape)
    assert jnp.allclose(y, y_ref, atol=1e-5, rtol=1e-5)

    print("KERNEL_OK")
</pallas_src>

<mosaic_0001>
module attributes {stable_mosaic.version = 11 : i64} {
  func.func @_interp_matmul_kernel(%arg0: i32, %arg1: memref<160x192xf32, #tpu.memory_space<vmem>>, %arg2: memref<192x384xf32, #tpu.memory_space<vmem>>, %arg3: memref<160x384xf32, #tpu.memory_space<vmem>>) attributes {dimension_semantics = [#tpu.dimension_semantics<parallel>], iteration_bounds = array<i64: 1>, scalar_prefetch = 0 : i64, scratch_operands = 0 : i64, tpu.core_type = #tpu.core_type<tc>, window_params = [{transform_indices = @transform_0, window_bounds = array<i64: 160, 192>}, {pipeline_mode = #tpu.pipeline_mode<synchronous>, transform_indices = @transform_1, window_bounds = array<i64: 192, 384>}, {transform_indices = @transform_2, window_bounds = array<i64: 160, 384>}]} {
    %c0 = arith.constant 0 : index
    %c0_0 = arith.constant 0 : index
    %0 = vector.load %arg1[%c0, %c0_0] : memref<160x192xf32, #tpu.memory_space<vmem>>, vector<160x192xf32>
    %c0_1 = arith.constant 0 : index
    %c0_2 = arith.constant 0 : index
    %1 = vector.load %arg2[%c0_1, %c0_2] : memref<192x384xf32, #tpu.memory_space<vmem>>, vector<192x384xf32>
    %cst = arith.constant dense<0.000000e+00> : vector<160x384xf32>
    %2 = tpu.matmul %0, %1, %cst {dimension_numbers = #tpu.dot_dimension_numbers<[1], [0], [0], [1], [0, 0, 1, 1], [], []>} : vector<160x192xf32>, vector<192x384xf32>, vector<160x384xf32> -> vector<160x384xf32>
    %c0_3 = arith.constant 0 : index
    %c0_4 = arith.constant 0 : index
    %3 = vector.load %arg3[%c0_3, %c0_4] : memref<160x384xf32, #tpu.memory_space<vmem>>, vector<160x384xf32>
    tpu.vector_store %arg3[%c0_3, %c0_4], %2 {strides = array<i32>} : memref<160x384xf32, #tpu.memory_space<vmem>>, vector<160x384xf32>,
    return
  }
  func.func @transform_0(%arg0: i32) -> (i32, i32) {
    %c0_i32 = arith.constant 0 : i32
    %c0_i32_0 = arith.constant 0 : i32
    return %arg0, %c0_i32 : i32, i32
  }
  func.func @transform_1(%arg0: i32) -> (i32, i32) {
    %c0_i32 = arith.constant 0 : i32
    %c0_i32_0 = arith.constant 0 : i32
    %c0_i32_1 = arith.constant 0 : i32
    return %c0_i32, %c0_i32_0 : i32, i32
  }
  func.func @transform_2(%arg0: i32) -> (i32, i32) {
    %c0_i32 = arith.constant 0 : i32
    %c0_i32_0 = arith.constant 0 : i32
    return %arg0, %c0_i32 : i32, i32
  }
}

</mosaic_0001>

<bundles_post_ra>
// kernel: tpu_custom_call.1
= control target key start
LH: loop header
LB: loop body
LE: loop exit
PB: predicated region body
PF: predicated region fallthrough
CT: control target
= control target key end

     0   :  { %7 = vsyncpa [#allocation3], 0  ;;  %s857_s0 = inlined_call_operand.hbm [shape: f32[160,192], index: 0, kind: input, shape index: {}]   ;;  %s858_s1 = inlined_call_operand.hbm [shape: f32[192,384], index: 1, kind: input, shape index: {}]   ;;  %s859_s2 = inlined_call_operand.hbm [shape: f32[160,288], index: 2, kind: output, shape index: {}]  }
   0x1   :  { %8 = vsyncpa [#allocation6], 0 }
   0x2   :  { %9 = vsyncpa [#allocation4], 0  ;;  %s755_s9 = smov [#allocation2]  }
   0x3   :  { %s15_s10 = sshll.u32 %s755_s9, 4  ;;  %s16_s10 = int_to_ptr.vmem [resolvable:$true] %s15_s10 }
   0x4   :  { %s697_s11 = scalar_lea.vmem %s16_s10, 5120  ;;  %p702_p1 = scmp.lt.s32.totalorder %s16_s10, %s16_s10 }
   0x5   :  { %p698_p0 = scmp.ne.s32.totalorder %s16_s10, %s697_s11  ;;  %p703_p2 = scmp.lt.s32.totalorder %s697_s11, %s697_s11 }
   0x7   :  { %p704_p3 = por %p703_p2, %p702_p1 }
   0x9   :  { %p705_p4 = pnand %p704_p3, %p698_p0 }
   0xb   :  { %708 = shalt.err (!%p705_p4)
}
   0xc   :  { %s756_s12 = smov 256   ;;  %s757_s13 = smov 16  }
   0xd   :  { %21 = dma.hbm_to_vmem [thread:$0]  %s857_s0, 5120, %s16_s10, [#allocation3], %s756_s12, %s756_s12, %s757_s13  }
   0xe   :  { %s758_s16 = smov [#allocation5]  }
   0xf   :  { %s27_s17 = sshll.u32 %s758_s16, 4  ;;  %s28_s17 = int_to_ptr.vmem [resolvable:$true] %s27_s17 }
  0x10   :  { %s717_s18 = scalar_lea.vmem %s28_s17, 9216  ;;  %p722_p6 = scmp.lt.s32.totalorder %s28_s17, %s28_s17 }
  0x11   :  { %p718_p5 = scmp.ne.s32.totalorder %s28_s17, %s717_s18  ;;  %p723_p7 = scmp.lt.s32.totalorder %s717_s18, %s717_s18 }
  0x13   :  { %p724_p8 = por %p723_p7, %p722_p6 }
  0x15   :  { %p725_p9 = pnand %p724_p8, %p718_p5 }
  0x17   :  { %728 = shalt.err (!%p725_p9)
}
  0x18   :  { %s759_s19 = smov 384   ;;  %s760_s20 = smov 24  }
  0x19   :  { %33 = dma.hbm_to_vmem [thread:$0]  %s858_s1, 9216, %s28_s17, [#allocation6], %s759_s19, %s759_s19, %s760_s20  }
  0x1a   :  { %749 = dma.done.wait [#allocation3], 5120  }
  0x1b   :  { %750 = vsyncadd [#allocation3], 4294962176 }
  0x1c   :  { %751 = dma.done.wait [#allocation6], 9216  }
  0x1d   :  { %752 = vsyncadd [#allocation6], 4294958080  ;;  %v761_v0 = vmov 0.0   ;;  %v126_v1 = vld [vmem:[#allocation5 + $0x170] sm:$0xff]  ;;  %v125_v2 = vld [vmem:[#allocation5 + $0x168] sm:$0xff]  ;;  %vm152_vm0 = vcmask 523264  }
  0x1e   :  { %398 = vmatprep.subr.mxu1 %v761_v0  ;;  %v127_v3 = vld [vmem:[#allocation5 + $0x178] sm:$0xff]  ;;  %213 = vmatprep.subr.mxu0 %v126_v1  ;;  %v122_v5 = vld [vmem:[#allocation5 + $0x150] sm:$0xff]  ;;  %v124_v6 = vld [vmem:[#allocation5 + $0x160] sm:$0xff]  ;;  %s762_s0 = smov [#allocation7]  }
  0x1f   :  { %399 = vmatpush1.msra.mxu1 %v127_v3  ;;  %v123_v4 = vld [vmem:[#allocation5 + $0x158] sm:$0xff]  ;;  %214 = vmatpush1.msra.mxu0 %v125_v2  ;;  %v120_v7 = vld [vmem:[#allocation5 + $0x140] sm:$0xff]  ;;  %v121_v8 = vld [vmem:[#allocation5 + $0x148] sm:$0xff]  ;;  %s628_s1 = sshll.u32 %s762_s0, 4  ;;  %s629_s1 = int_to_ptr.vmem [resolvable:$true] %s628_s1 }
  0x20   :  { %400 = vmatprep.subr.mxu1 %v761_v0  ;;  %215 = vmatprep.subr.mxu0 %v123_v4  ;;  %v119_v9 = vld [vmem:[#allocation5 + $0x138] sm:$0xff]  ;;  %v117_v10 = vld [vmem:[#allocation5 + $0x128] sm:$0xff]  ;;  %v118_v11 = vld [vmem:[#allocation5 + $0x130] sm:$0xff]  ;;  %s729_s23 = scalar_lea.vmem %s629_s1, 7680  ;;  %p734_p11 = scmp.lt.s32.totalorder %s629_s1, %s629_s1 }
  0x21   :  { %401 = vmatpush1.msra.mxu1 %v124_v6  ;;  %216 = vmatpush1.msra.mxu0 %v122_v5  ;;  %v116_v12 = vld [vmem:[#allocation5 + $0x120] sm:$0xff]  ;;  %v114_v13 = vld [vmem:[#allocation5 + $0x110] sm:$0xff]  ;;  %v115_v14 = vld [vmem:[#allocation5 + $0x118] sm:$0xff]  ;;  %p730_p10 = scmp.ne.s32.totalorder %s629_s1, %s729_s23  ;;  %p735_p12 = scmp.lt.s32.totalorder %s729_s23, %s729_s23 }
  0x22   :  { %402 = vmatprep.subr.mxu1 %v761_v0  ;;  %217 = vmatprep.subr.mxu0 %v120_v7  ;;  %v113_v15 = vld [vmem:[#allocation5 + $0x108] sm:$0xff]  ;;  %v111_v16 = vld [vmem:[#allocation5 + $0xf8] sm:$0xff]  ;;  %v112_v17 = vld [vmem:[#allocation5 + $0x100] sm:$0xff] }
  0x23   :  { %403 = vmatpush1.msra.mxu1 %v121_v8  ;;  %218 = vmatpush1.msra.mxu0 %v119_v9  ;;  %v110_v18 = vld [vmem:[#allocation5 + $0xf0] sm:$0xff]  ;;  %v108_v19 = vld [vmem:[#allocation5 + $0xe0] sm:$0xff]  ;;  %v109_v20 = vld [vmem:[#allocation5 + $0xe8] sm:$0xff]  ;;  %p736_p13 = por %p735_p12, %p734_p11 }
  0x24   :  { %404 = vmatprep.subr.mxu1 %v761_v0  ;;  %219 = vmatprep.subr.mxu0 %v117_v10  ;;  %v107_v21 = vld [vmem:[#allocation5 + $0xd8] sm:$0xff]  ;;  %v105_v22 = vld [vmem:[#allocation5 + $0xc8] sm:$0xff]  ;;  %v106_v23 = vld [vmem:[#allocation5 + $0xd0] sm:$0xff] }
  0x25   :  { %405 = vmatpush1.msra.mxu1 %v118_v11  ;;  %220 = vmatpush1.msra.mxu0 %v116_v12  ;;  %v104_v24 = vld [vmem:[#allocation5 + $0xc0] sm:$0xff]  ;;  %v102_v25 = vld [vmem:[#allocation5 + $0xb0] sm:$0xff]  ;;  %v103_v26 = vld [vmem:[#allocation5 + $0xb8] sm:$0xff]  ;;  %p737_p0 = pnand %p736_p13, %p730_p10 }
  0x26   :  { %406 = vmatprep.subr.mxu1 %v761_v0  ;;  %221 = vmatprep.subr.mxu0 %v114_v13  ;;  %v101_v27 = vld [vmem:[#allocation5 + $0xa8] sm:$0xff]  ;;  %v99_v28 = vld [vmem:[#allocation5 + $0x98] sm:$0xff]  ;;  %v100_v29 = vld [vmem:[#allocation5 + $0xa0] sm:$0xff] }
  0x27   :  { %407 = vmatpush1.msra.mxu1 %v115_v14  ;;  %222 = vmatpush1.msra.mxu0 %v113_v15  ;;  %v98_v30 = vld [vmem:[#allocation5 + $0x90] sm:$0xff]  ;;  %v96_v31 = vld [vmem:[#allocation5 + $0x80] sm:$0xff]  ;;  %v97_v32 = vld [vmem:[#allocation5 + $0x88] sm:$0xff] }
  0x28   :  { %408 = vmatprep.subr.mxu1 %v761_v0  ;;  %223 = vmatprep.subr.mxu0 %v111_v16  ;;  %v95_v33 = vld [vmem:[#allocation5 + $0x78] sm:$0xff]  ;;  %v93_v34 = vld [vmem:[#allocation5 + $0x68] sm:$0xff]  ;;  %v94_v35 = vld [vmem:[#allocation5 + $0x70] sm:$0xff] }
  0x29   :  { %409 = vmatpush1.msra.mxu1 %v112_v17  ;;  %224 = vmatpush1.msra.mxu0 %v110_v18  ;;  %v92_v36 = vld [vmem:[#allocation5 + $0x60] sm:$0xff]  ;;  %v90_v37 = vld [vmem:[#allocation5 + $0x50] sm:$0xff]  ;;  %v91_v38 = vld [vmem:[#allocation5 + $0x58] sm:$0xff] }
  0x2a   :  { %410 = vmatprep.subr.mxu1 %v761_v0  ;;  %225 = vmatprep.subr.mxu0 %v108_v19  ;;  %v89_v39 = vld [vmem:[#allocation5 + $0x48] sm:$0xff]  ;;  %v87_v40 = vld [vmem:[#allocation5 + $0x38] sm:$0xff]  ;;  %v88_v41 = vld [vmem:[#allocation5 + $0x40] sm:$0xff] }
  0x2b   :  { %411 = vmatpush1.msra.mxu1 %v109_v20  ;;  %226 = vmatpush1.msra.mxu0 %v107_v21  ;;  %v86_v42 = vld [vmem:[#allocation5 + $0x30] sm:$0xff]  ;;  %v84_v43 = vld [vmem:[#allocation5 + $0x20] sm:$0xff]  ;;  %v85_v44 = vld [vmem:[#allocation5 + $0x28] sm:$0xff] }
  0x2c   :  { %412 = vmatprep.subr.mxu1 %v761_v0  ;;  %227 = vmatprep.subr.mxu0 %v105_v22  ;;  %v83_v45 = vld [vmem:[#allocation5 + $0x18] sm:$0xff]  ;;  %v81_v46 = vld [vmem:[#allocation5 + $0x8] sm:$0xff]  ;;  %v82_v47 = vld [vmem:[#allocation5 + $0x10] sm:$0xff] }
  0x2d   :  { %413 = vmatpush1.msra.mxu1 %v106_v23  ;;  %228 = vmatpush1.msra.mxu0 %v104_v24  ;;  %v80_v48 = vld [vmem:[#allocation5] sm:$0xff]  ;;  %v150_v49 = vld [vmem:[#allocation5 + $0x230] sm:$0xff]  ;;  %v151_v50 = vld [vmem:[#allocation5 + $0x238] sm:$0xff] }
  0x2e   :  { %414 = vmatprep.subr.mxu1 %v761_v0  ;;  %229 = vmatprep.subr.mxu0 %v102_v25  ;;  %v149_v51 = vld [vmem:[#allocation5 + $0x228] sm:$0xff]  ;;  %v147_v52 = vld [vmem:[#allocation5 + $0x218] sm:$0xff]  ;;  %v148_v53 = vld [vmem:[#allocation5 + $0x220] sm:$0xff] }
  0x2f   :  { %415 = vmatpush1.msra.mxu1 %v103_v26  ;;  %230 = vmatpush1.msra.mxu0 %v101_v27  ;;  %v146_v54 = vld [vmem:[#allocation5 + $0x210] sm:$0xff]  ;;  %v144_v55 = vld [vmem:[#allocation5 + $0x200] sm:$0xff]  ;;  %v145_v56 = vld [vmem:[#allocation5 + $0x208] sm:$0xff] }
  0x30   :  { %416 = vmatprep.subr.mxu1 %v761_v0  ;;  %231 = vmatprep.subr.mxu0 %v99_v28  ;;  %v143_v57 = vld [vmem:[#allocation5 + $0x1f8] sm:$0xff]  ;;  %v141_v58 = vld [vmem:[#allocation5 + $0x1e8] sm:$0xff]  ;;  %v142_v59 = vld [vmem:[#allocation5 + $0x1f0] sm:$0xff] }
  0x31   :  { %417 = vmatpush1.msra.mxu1 %v100_v29  ;;  %232 = vmatpush1.msra.mxu0 %v98_v30  ;;  %v140_v60 = vld [vmem:[#allocation5 + $0x1e0] sm:$0xff]  ;;  %v138_v61 = vld [vmem:[#allocation5 + $0x1d0] sm:$0xff]  ;;  %v139_v62 = vld [vmem:[#allocation5 + $0x1d8] sm:$0xff] }
  0x32   :  { %418 = vmatprep.subr.mxu1 %v761_v0  ;;  %233 = vmatprep.subr.mxu0 %v96_v31  ;;  %v137_v63 = vld [vmem:[#allocation5 + $0x1c8] sm:$0xff]  ;;  %v135_v1 = vld [vmem:[#allocation5 + $0x1b8] sm:$0xff]  ;;  %v136_v2 = vld [vmem:[#allocation5 + $0x1c0] sm:$0xff] }
  0x33   :  { %419 = vmatpush1.msra.mxu1 %v97_v32  ;;  %234 = vmatpush1.msra.mxu0 %v95_v33  ;;  %v134_v3 = vld [vmem:[#allocation5 + $0x1b0] sm:$0xff]  ;;  %v132_v4 = vld [vmem:[#allocation5 + $0x1a0] sm:$0xff]  ;;  %v133_v5 = vld [vmem:[#allocation5 + $0x1a8] sm:$0xff] }
  0x34   :  { %420 = vmatprep.subr.mxu1 %v761_v0  ;;  %235 = vmatprep.subr.mxu0 %v93_v34  ;;  %v131_v6 = vld [vmem:[#allocation5 + $0x198] sm:$0xff]  ;;  %v129_v7 = vld [vmem:[#allocation5 + $0x188] sm:$0xff]  ;;  %v128_v9 = vld [vmem:[#allocation5 + $0x180] sm:$0xff] }
  0x35   :  { %421 = vmatpush1.msra.mxu1 %v94_v35  ;;  %236 = vmatpush1.msra.mxu0 %v92_v36  ;;  %v41_v8 = vld [vmem:[#allocation2 + $0x8] sm:$0xff]  ;;  %v130_v10 = vld [vmem:[#allocation5 + $0x190] sm:$0xff]  ;;  %v40_v11 = vld [vmem:[#allocation2] sm:$0xff] }
  0x36   :  { %422 = vmatprep.subr.mxu1 %v761_v0  ;;  %237 = vmatprep.subr.mxu0 %v90_v37  ;;  %v43_v12 = vld [vmem:[#allocation2 + $0x18] sm:$0xff]  ;;  %v42_v13 = vld [vmem:[#allocation2 + $0x10] sm:$0xff]  ;;  %v45_v14 = vld [vmem:[#allocation2 + $0x28] sm:$0xff] }
  0x37   :  { %423 = vmatpush1.msra.mxu1 %v91_v38  ;;  %238 = vmatpush1.msra.mxu0 %v89_v39  ;;  %v47_v15 = vld [vmem:[#allocation2 + $0x38] sm:$0xff]  ;;  %v46_v16 = vld [vmem:[#allocation2 + $0x30] sm:$0xff]  ;;  %v49_v17 = vld [vmem:[#allocation2 + $0x48] sm:$0xff] }
  0x38   :  { %424 = vmatprep.subr.mxu1 %v761_v0  ;;  %239 = vmatprep.subr.mxu0 %v87_v40  ;;  %v48_v18 = vld [vmem:[#allocation2 + $0x40] sm:$0xff]  ;;  %v51_v19 = vld [vmem:[#allocation2 + $0x58] sm:$0xff]  ;;  %v50_v20 = vld [vmem:[#allocation2 + $0x50] sm:$0xff] }
  0x39   :  { %425 = vmatpush1.msra.mxu1 %v88_v41  ;;  %240 = vmatpush1.msra.mxu0 %v86_v42  ;;  %v53_v21 = vld [vmem:[#allocation2 + $0x68] sm:$0xff]  ;;  %v52_v22 = vld [vmem:[#allocation2 + $0x60] sm:$0xff]  ;;  %v55_v23 = vld [vmem:[#allocation2 + $0x78] sm:$0xff] }
  0x3a   :  { %426 = vmatprep.subr.mxu1 %v761_v0  ;;  %241 = vmatprep.subr.mxu0 %v84_v43  ;;  %v54_v24 = vld [vmem:[#allocation2 + $0x70] sm:$0xff]  ;;  %v57_v25 = vld [vmem:[#allocation2 + $0x88] sm:$0xff]  ;;  %v56_v26 = vld [vmem:[#allocation2 + $0x80] sm:$0xff] }
  0x3b   :  { %427 = vmatpush1.msra.mxu1 %v85_v44  ;;  %242 = vmatpush1.msra.mxu0 %v83_v45  ;;  %v59_v27 = vld [vmem:[#allocation2 + $0x98] sm:$0xff]  ;;  %v58_v28 = vld [vmem:[#allocation2 + $0x90] sm:$0xff]  ;;  %v61_v29 = vld [vmem:[#allocation2 + $0xa8] sm:$0xff] }
  0x3c   :  { %428 = vmatprep.subr.mxu1 %v761_v0  ;;  %243 = vmatprep.subr.mxu0 %v81_v46  ;;  %v60_v30 = vld [vmem:[#allocation2 + $0xa0] sm:$0xff]  ;;  %v63_v31 = vld [vmem:[#allocation2 + $0xb8] sm:$0xff]  ;;  %v62_v32 = vld [vmem:[#allocation2 + $0xb0] sm:$0xff] }
  0x3d   :  { %429 = vmatpush1.msra.mxu1 %v82_v47  ;;  %244 = vmatpush1.msra.mxu0 %v80_v48  ;;  %v65_v33 = vld [vmem:[#allocation2 + $0xc8] sm:$0xff]  ;;  %v64_v34 = vld [vmem:[#allocation2 + $0xc0] sm:$0xff]  ;;  %v67_v35 = vld [vmem:[#allocation2 + $0xd8] sm:$0xff] }
  0x3e   :  { %446 = vmatprep.subr.mxu1 %v761_v0  ;;  %261 = vmatprep.subr.mxu0 %v150_v49  ;;  %v66_v36 = vld [vmem:[#allocation2 + $0xd0] sm:$0xff]  ;;  %v69_v37 = vld [vmem:[#allocation2 + $0xe8] sm:$0xff]  ;;  %v68_v38 = vld [vmem:[#allocation2 + $0xe0] sm:$0xff] }
  0x3f   :  { %447 = vmatpush2.msra.mxu1 %v151_v50  ;;  %262 = vmatpush2.msra.mxu0 %v149_v51  ;;  %v71_v39 = vld [vmem:[#allocation2 + $0xf8] sm:$0xff]  ;;  %v70_v40 = vld [vmem:[#allocation2 + $0xf0] sm:$0xff]  ;;  %v73_v41 = vld [vmem:[#allocation2 + $0x108] sm:$0xff] }
  0x40   :  { %448 = vmatprep.subr.mxu1 %v761_v0  ;;  %263 = vmatprep.subr.mxu0 %v147_v52  ;;  %v72_v42 = vld [vmem:[#allocation2 + $0x100] sm:$0xff]  ;;  %v75_v43 = vld [vmem:[#allocation2 + $0x118] sm:$0xff]  ;;  %v74_v44 = vld [vmem:[#allocation2 + $0x110] sm:$0xff] }
  0x41   :  { %449 = vmatpush2.msra.mxu1 %v148_v53  ;;  %264 = vmatpush2.msra.mxu0 %v146_v54  ;;  %v77_v45 = vld [vmem:[#allocation2 + $0x128] sm:$0xff]  ;;  %v76_v46 = vld [vmem:[#allocation2 + $0x120] sm:$0xff]  ;;  %v79_v47 = vld [vmem:[#allocation2 + $0x138] sm:$0xff] }
  0x42   :  { %450 = vmatprep.subr.mxu1 %v761_v0  ;;  %265 = vmatprep.subr.mxu0 %v144_v55  ;;  %v78_v48 = vld [vmem:[#allocation2 + $0x130] sm:$0xff] }
  0x43   :  { %451 = vmatpush2.msra.mxu1 %v145_v56  ;;  %266 = vmatpush2.msra.mxu0 %v143_v57 }
  0x44   :  { %452 = vmatprep.subr.mxu1 %v761_v0  ;;  %267 = vmatprep.subr.mxu0 %v141_v58 }
  0x45   :  { %453 = vmatpush2.msra.mxu1 %v142_v59  ;;  %268 = vmatpush2.msra.mxu0 %v140_v60 }
  0x46   :  { %454 = vmatprep.subr.mxu1 %v761_v0  ;;  %269 = vmatprep.subr.mxu0 %v138_v61 }
  0x47   :  { %455 = vmatpush2.msra.mxu1 %v139_v62  ;;  %270 = vmatpush2.msra.mxu0 %v137_v63 }
  0x48   :  { %456 = vmatprep.subr.mxu1 %v761_v0  ;;  %271 = vmatprep.subr.mxu0 %v135_v1 }
  0x49   :  { %457 = vmatpush2.msra.mxu1 %v136_v2  ;;  %272 = vmatpush2.msra.mxu0 %v134_v3 }
  0x4a   :  { %458 = vmatprep.subr.mxu1 %v761_v0  ;;  %273 = vmatprep.subr.mxu0 %v132_v4 }
  0x4b   :  { %459 = vmatpush2.msra.mxu1 %v133_v5  ;;  %274 = vmatpush2.msra.mxu0 %v131_v6 }
  0x4c   :  { %460 = vmatprep.subr.mxu1 %v761_v0  ;;  %275 = vmatprep.subr.mxu0 %v129_v7  ;;  %v44_v0 = vld [vmem:[#allocation2 + $0x20] sm:$0xff] }
  0x4d   :  { %641 = vmatprep.mubr.msk.f32.mxu0 %vm152_vm0, %v41_v8  ;;  %276 = vmatpush2.msra.mxu0 %v128_v9 }
  0x4e   :  { %461 = vmatpush2.msra.mxu1 %v130_v10  ;;  %661 = vmatprep.mubr.msk.f32.mxu1 %vm152_vm0, %v41_v8 }
  0x4f   :  { %278 = vmatmul.mubr.f32.vlgmr.msra.gmra.mxu0 %v40_v11  ;;  %463 = vmatmul.mubr.f32.vlgmr.msra.gmra.mxu1 %v40_v11 }
  0x50   :  { %642 = vmatprep.mubr.msk.f32.mxu0 %vm152_vm0, %v43_v12  ;;  %662 = vmatprep.mubr.msk.f32.mxu1 %vm152_vm0, %v43_v12 }
  0x53   :  { %284 = vmatmul.mubr.f32.gmra.mxu0 %v42_v13  ;;  %468 = vmatmul.mubr.f32.gmra.mxu1 %v42_v13 }
  0x54   :  { %643 = vmatprep.mubr.msk.f32.mxu0 %vm152_vm0, %v45_v14  ;;  %663 = vmatprep.mubr.msk.f32.mxu1 %vm152_vm0, %v45_v14 }
  0x57   :  { %290 = vmatmul.mubr.f32.gmra.mxu0 %v44_v0  ;;  %473 = vmatmul.mubr.f32.gmra.mxu1 %v44_v0 }
  0x58   :  { %644 = vmatprep.mubr.msk.f32.mxu0 %vm152_vm0, %v47_v15  ;;  %664 = vmatprep.mubr.msk.f32.mxu1 %vm152_vm0, %v47_v15 }
  0x5b   :  { %296 = vmatmul.mubr.f32.gmra.mxu0 %v46_v16  ;;  %478 = vmatmul.mubr.f32.gmra.mxu1 %v46_v16 }
  0x5c   :  { %645 = vmatprep.mubr.msk.f32.mxu0 %vm152_vm0, %v49_v17  ;;  %665 = vmatprep.mubr.msk.f32.mxu1 %vm152_vm0, %v49_v17 }
  0x5f   :  { %302 = vmatmul.mubr.f32.gmra.mxu0 %v48_v18  ;;  %483 = vmatmul.mubr.f32.gmra.mxu1 %v48_v18 }
  0x60   :  { %646 = vmatprep.mubr.msk.f32.mxu0 %vm152_vm0, %v51_v19  ;;  %666 = vmatprep.mubr.msk.f32.mxu1 %vm152_vm0, %v51_v19 }
  0x63   :  { %308 = vmatmul.mubr.f32.gmra.mxu0 %v50_v20  ;;  %488 = vmatmul.mubr.f32.gmra.mxu1 %v50_v20 }
  0x64   :  { %647 = vmatprep.mubr.msk.f32.mxu0 %vm152_vm0, %v53_v21  ;;  %667 = vmatprep.mubr.msk.f32.mxu1 %vm152_vm0, %v53_v21 }
  0x67   :  { %314 = vmatmul.mubr.f32.gmra.mxu0 %v52_v22  ;;  %493 = vmatmul.mubr.f32.gmra.mxu1 %v52_v22 }
  0x68   :  { %648 = vmatprep.mubr.msk.f32.mxu0 %vm152_vm0, %v55_v23  ;;  %668 = vmatprep.mubr.msk.f32.mxu1 %vm152_vm0, %v55_v23 }
  0x6b   :  { %320 = vmatmul.mubr.f32.gmra.mxu0 %v54_v24  ;;  %498 = vmatmul.mubr.f32.gmra.mxu1 %v54_v24 }
  0x6c   :  { %649 = vmatprep.mubr.msk.f32.mxu0 %vm152_vm0, %v57_v25  ;;  %669 = vmatprep.mubr.msk.f32.mxu1 %vm152_vm0, %v57_v25 }
  0x6f   :  { %326 = vmatmul.mubr.f32.gmra.mxu0 %v56_v26  ;;  %503 = vmatmul.mubr.f32.gmra.mxu1 %v56_v26 }
  0x70   :  { %650 = vmatprep.mubr.msk.f32.mxu0 %vm152_vm0, %v59_v27  ;;  %670 = vmatprep.mubr.msk.f32.mxu1 %vm152_vm0, %v59_v27 }
  0x73   :  { %332 = vmatmul.mubr.f32.gmra.mxu0 %v58_v28  ;;  %508 = vmatmul.mubr.f32.gmra.mxu1 %v58_v28 }
  0x74   :  { %651 = vmatprep.mubr.msk.f32.mxu0 %vm152_vm0, %v61_v29  ;;  %671 = vmatprep.mubr.msk.f32.mxu1 %vm152_vm0, %v61_v29 }
  0x77   :  { %338 = vmatmul.mubr.f32.gmra.mxu0 %v60_v30  ;;  %513 = vmatmul.mubr.f32.gmra.mxu1 %v60_v30 }
  0x78   :  { %652 = vmatprep.mubr.msk.f32.mxu0 %vm152_vm0, %v63_v31  ;;  %672 = vmatprep.mubr.msk.f32.mxu1 %vm152_vm0, %v63_v31 }
  0x7b   :  { %344 = vmatmul.mubr.f32.gmra.mxu0 %v62_v32  ;;  %518 = vmatmul.mubr.f32.gmra.mxu1 %v62_v32 }
  0x7c   :  { %653 = vmatprep.mubr.msk.f32.mxu0 %vm152_vm0, %v65_v33  ;;  %673 = vmatprep.mubr.msk.f32.mxu1 %vm152_vm0, %v65_v33 }
  0x7f   :  { %350 = vmatmul.mubr.f32.gmra.mxu0 %v64_v34  ;;  %523 = vmatmul.mubr.f32.gmra.mxu1 %v64_v34 }
  0x80   :  { %654 = vmatprep.mubr.msk.f32.mxu0 %vm152_vm0, %v67_v35  ;;  %674 = vmatprep.mubr.msk.f32.mxu1 %vm152_vm0, %v67_v35 }
  0x83   :  { %356 = vmatmul.mubr.f32.gmra.mxu0 %v66_v36  ;;  %528 = vmatmul.mubr.f32.gmra.mxu1 %v66_v36 }
  0x84   :  { %655 = vmatprep.mubr.msk.f32.mxu0 %vm152_vm0, %v69_v37  ;;  %675 = vmatprep.mubr.msk.f32.mxu1 %vm152_vm0, %v69_v37 }
  0x87   :  { %362 = vmatmul.mubr.f32.gmra.mxu0 %v68_v38  ;;  %533 = vmatmul.mubr.f32.gmra.mxu1 %v68_v38 }
  0x88   :  { %656 = vmatprep.mubr.msk.f32.mxu0 %vm152_vm0, %v71_v39  ;;  %676 = vmatprep.mubr.msk.f32.mxu1 %vm152_vm0, %v71_v39 }
  0x8b   :  { %368 = vmatmul.mubr.f32.gmra.mxu0 %v70_v40  ;;  %538 = vmatmul.mubr.f32.gmra.mxu1 %v70_v40 }
  0x8c   :  { %657 = vmatprep.mubr.msk.f32.mxu0 %vm152_vm0, %v73_v41  ;;  %677 = vmatprep.mubr.msk.f32.mxu1 %vm152_vm0, %v73_v41 }
  0x8f   :  { %374 = vmatmul.mubr.f32.gmra.mxu0 %v72_v42  ;;  %543 = vmatmul.mubr.f32.gmra.mxu1 %v72_v42 }
  0x90   :  { %658 = vmatprep.mubr.msk.f32.mxu0 %vm152_vm0, %v75_v43  ;;  %678 = vmatprep.mubr.msk.f32.mxu1 %vm152_vm0, %v75_v43 }
  0x93   :  { %380 = vmatmul.mubr.f32.gmra.mxu0 %v74_v44  ;;  %548 = vmatmul.mubr.f32.gmra.mxu1 %v74_v44 }
  0x94   :  { %659 = vmatprep.mubr.msk.f32.mxu0 %vm152_vm0, %v77_v45  ;;  %679 = vmatprep.mubr.msk.f32.mxu1 %vm152_vm0, %v77_v45 }
  0x97   :  { %386 = vmatmul.mubr.f32.gmra.mxu0 %v76_v46  ;;  %553 = vmatmul.mubr.f32.gmra.mxu1 %v76_v46 }
  0x98   :  { %660 = vmatprep.mubr.msk.f32.mxu0 %vm152_vm0, %v79_v47  ;;  %680 = vmatprep.mubr.msk.f32.mxu1 %vm152_vm0, %v79_v47 }
  0x9b   :  { %392 = vmatmul.mubr.f32.gmra.mxu0 %v78_v48  ;;  %558 = vmatmul.mubr.f32.gmra.mxu1 %v78_v48 }
 0x10f   :  { %v279_v49 = vpop.f32.mrf.mxu0  ;;  %v464_v50 = vpop.f32.mrf.mxu1 }
 0x110   :  { %563 = vst [vmem:[#allocation7] sm:$0xff] %v279_v49  ;;  %565 = vst [vmem:[#allocation7 + $0x10] sm:$0xff] %v464_v50 }
 0x111   :  { %v281_v51 = vpop.f32.mrf.mxu0  ;;  %v466_v52 = vpop.f32.mrf.mxu1 }
 0x112   :  { %564 = vst [vmem:[#allocation7 + $0x8] sm:$0xff] %v281_v51 }
 0x113   :  { %v285_v53 = vpop.f32.mrf.mxu0  ;;  %v469_v54 = vpop.f32.mrf.mxu1 }
 0x114   :  { %566 = vst [vmem:[#allocation7 + $0x18] sm:$0xff] %v285_v53  ;;  %568 = vst [vmem:[#allocation7 + $0x28] sm:$0xff] %v469_v54 }
 0x115   :  { %v287_v55 = vpop.f32.mrf.mxu0  ;;  %v471_v56 = vpop.f32.mrf.mxu1 }
 0x116   :  { %567 = vst [vmem:[#allocation7 + $0x20] sm:$0xff] %v287_v55 }
 0x117   :  { %v291_v57 = vpop.f32.mrf.mxu0  ;;  %v474_v58 = vpop.f32.mrf.mxu1 }
 0x118   :  { %569 = vst [vmem:[#allocation7 + $0x30] sm:$0xff] %v291_v57  ;;  %571 = vst [vmem:[#allocation7 + $0x40] sm:$0xff] %v474_v58 }
 0x119   :  { %v293_v59 = vpop.f32.mrf.mxu0  ;;  %v476_v60 = vpop.f32.mrf.mxu1 }
 0x11a   :  { %570 = vst [vmem:[#allocation7 + $0x38] sm:$0xff] %v293_v59 }
 0x11b   :  { %v297_v61 = vpop.f32.mrf.mxu0  ;;  %v479_v62 = vpop.f32.mrf.mxu1 }
 0x11c   :  { %572 = vst [vmem:[#allocation7 + $0x48] sm:$0xff] %v297_v61  ;;  %574 = vst [vmem:[#allocation7 + $0x58] sm:$0xff] %v479_v62 }
 0x11d   :  { %v299_v63 = vpop.f32.mrf.mxu0  ;;  %v481_v1 = vpop.f32.mrf.mxu1 }
 0x11e   :  { %573 = vst [vmem:[#allocation7 + $0x50] sm:$0xff] %v299_v63 }
 0x11f   :  { %v303_v2 = vpop.f32.mrf.mxu0  ;;  %v484_v3 = vpop.f32.mrf.mxu1 }
 0x120   :  { %575 = vst [vmem:[#allocation7 + $0x60] sm:$0xff] %v303_v2  ;;  %577 = vst [vmem:[#allocation7 + $0x70] sm:$0xff] %v484_v3 }
 0x121   :  { %v305_v4 = vpop.f32.mrf.mxu0  ;;  %v486_v5 = vpop.f32.mrf.mxu1 }
 0x122   :  { %576 = vst [vmem:[#allocation7 + $0x68] sm:$0xff] %v305_v4 }
 0x123   :  { %v309_v6 = vpop.f32.mrf.mxu0  ;;  %v489_v7 = vpop.f32.mrf.mxu1 }
 0x124   :  { %578 = vst [vmem:[#allocation7 + $0x78] sm:$0xff] %v309_v6  ;;  %580 = vst [vmem:[#allocation7 + $0x88] sm:$0xff] %v489_v7 }
 0x125   :  { %v311_v8 = vpop.f32.mrf.mxu0  ;;  %v491_v9 = vpop.f32.mrf.mxu1 }
 0x126   :  { %579 = vst [vmem:[#allocation7 + $0x80] sm:$0xff] %v311_v8 }
 0x127   :  { %v315_v10 = vpop.f32.mrf.mxu0  ;;  %v494_v11 = vpop.f32.mrf.mxu1 }
 0x128   :  { %581 = vst [vmem:[#allocation7 + $0x90] sm:$0xff] %v315_v10  ;;  %583 = vst [vmem:[#allocation7 + $0xa0] sm:$0xff] %v494_v11 }
 0x129   :  { %v317_v12 = vpop.f32.mrf.mxu0  ;;  %v496_v13 = vpop.f32.mrf.mxu1 }
 0x12a   :  { %582 = vst [vmem:[#allocation7 + $0x98] sm:$0xff] %v317_v12 }
 0x12b   :  { %v321_v14 = vpop.f32.mrf.mxu0  ;;  %v499_v0 = vpop.f32.mrf.mxu1 }
 0x12c   :  { %584 = vst [vmem:[#allocation7 + $0xa8] sm:$0xff] %v321_v14  ;;  %586 = vst [vmem:[#allocation7 + $0xb8] sm:$0xff] %v499_v0 }
 0x12d   :  { %v323_v15 = vpop.f32.mrf.mxu0  ;;  %v501_v16 = vpop.f32.mrf.mxu1 }
 0x12e   :  { %585 = vst [vmem:[#allocation7 + $0xb0] sm:$0xff] %v323_v15 }
 0x12f   :  { %v327_v17 = vpop.f32.mrf.mxu0  ;;  %v504_v18 = vpop.f32.mrf.mxu1 }
 0x130   :  { %587 = vst [vmem:[#allocation7 + $0xc0] sm:$0xff] %v327_v17  ;;  %589 = vst [vmem:[#allocation7 + $0xd0] sm:$0xff] %v504_v18 }
 0x131   :  { %v329_v19 = vpop.f32.mrf.mxu0  ;;  %v506_v20 = vpop.f32.mrf.mxu1 }
 0x132   :  { %588 = vst [vmem:[#allocation7 + $0xc8] sm:$0xff] %v329_v19 }
 0x133   :  { %v333_v21 = vpop.f32.mrf.mxu0  ;;  %v509_v22 = vpop.f32.mrf.mxu1 }
 0x134   :  { %590 = vst [vmem:[#allocation7 + $0xd8] sm:$0xff] %v333_v21  ;;  %592 = vst [vmem:[#allocation7 + $0xe8] sm:$0xff] %v509_v22 }
 0x135   :  { %v335_v23 = vpop.f32.mrf.mxu0  ;;  %v511_v24 = vpop.f32.mrf.mxu1 }
 0x136   :  { %591 = vst [vmem:[#allocation7 + $0xe0] sm:$0xff] %v335_v23 }
 0x137   :  { %v339_v25 = vpop.f32.mrf.mxu0  ;;  %v514_v26 = vpop.f32.mrf.mxu1 }
 0x138   :  { %593 = vst [vmem:[#allocation7 + $0xf0] sm:$0xff] %v339_v25  ;;  %595 = vst [vmem:[#allocation7 + $0x100] sm:$0xff] %v514_v26 }
 0x139   :  { %v341_v27 = vpop.f32.mrf.mxu0  ;;  %v516_v28 = vpop.f32.mrf.mxu1 }
 0x13a   :  { %594 = vst [vmem:[#allocation7 + $0xf8] sm:$0xff] %v341_v27 }
 0x13b   :  { %v345_v29 = vpop.f32.mrf.mxu0  ;;  %v519_v30 = vpop.f32.mrf.mxu1 }
 0x13c   :  { %596 = vst [vmem:[#allocation7 + $0x108] sm:$0xff] %v345_v29  ;;  %598 = vst [vmem:[#allocation7 + $0x118] sm:$0xff] %v519_v30 }
 0x13d   :  { %v347_v31 = vpop.f32.mrf.mxu0  ;;  %v521_v32 = vpop.f32.mrf.mxu1 }
 0x13e   :  { %597 = vst [vmem:[#allocation7 + $0x110] sm:$0xff] %v347_v31 }
 0x13f   :  { %v351_v33 = vpop.f32.mrf.mxu0  ;;  %v524_v34 = vpop.f32.mrf.mxu1 }
 0x140   :  { %599 = vst [vmem:[#allocation7 + $0x120] sm:$0xff] %v351_v33  ;;  %601 = vst [vmem:[#allocation7 + $0x130] sm:$0xff] %v524_v34 }
 0x141   :  { %v353_v35 = vpop.f32.mrf.mxu0  ;;  %v526_v36 = vpop.f32.mrf.mxu1 }
 0x142   :  { %600 = vst [vmem:[#allocation7 + $0x128] sm:$0xff] %v353_v35 }
 0x143   :  { %v357_v37 = vpop.f32.mrf.mxu0  ;;  %v529_v38 = vpop.f32.mrf.mxu1 }
 0x144   :  { %602 = vst [vmem:[#allocation7 + $0x138] sm:$0xff] %v357_v37  ;;  %604 = vst [vmem:[#allocation7 + $0x148] sm:$0xff] %v529_v38 }
 0x145   :  { %v359_v39 = vpop.f32.mrf.mxu0  ;;  %v531_v40 = vpop.f32.mrf.mxu1 }
 0x146   :  { %603 = vst [vmem:[#allocation7 + $0x140] sm:$0xff] %v359_v39 }
 0x147   :  { %v363_v41 = vpop.f32.mrf.mxu0  ;;  %v534_v42 = vpop.f32.mrf.mxu1 }
 0x148   :  { %605 = vst [vmem:[#allocation7 + $0x150] sm:$0xff] %v363_v41  ;;  %607 = vst [vmem:[#allocation7 + $0x160] sm:$0xff] %v534_v42 }
 0x149   :  { %v365_v43 = vpop.f32.mrf.mxu0  ;;  %v536_v44 = vpop.f32.mrf.mxu1 }
 0x14a   :  { %606 = vst [vmem:[#allocation7 + $0x158] sm:$0xff] %v365_v43 }
 0x14b   :  { %v369_v45 = vpop.f32.mrf.mxu0  ;;  %v539_v46 = vpop.f32.mrf.mxu1 }
 0x14c   :  { %608 = vst [vmem:[#allocation7 + $0x168] sm:$0xff] %v369_v45  ;;  %610 = vst [vmem:[#allocation7 + $0x178] sm:$0xff] %v539_v46 }
 0x14d   :  { %v371_v47 = vpop.f32.mrf.mxu0  ;;  %v541_v48 = vpop.f32.mrf.mxu1 }
 0x14e   :  { %609 = vst [vmem:[#allocation7 + $0x170] sm:$0xff] %v371_v47 }
 0x14f   :  { %v375_v49 = vpop.f32.mrf.mxu0  ;;  %v544_v50 = vpop.f32.mrf.mxu1 }
 0x150   :  { %611 = vst [vmem:[#allocation7 + $0x180] sm:$0xff] %v375_v49  ;;  %613 = vst [vmem:[#allocation7 + $0x190] sm:$0xff] %v544_v50 }
 0x151   :  { %v377_v51 = vpop.f32.mrf.mxu0  ;;  %v546_v52 = vpop.f32.mrf.mxu1 }
 0x152   :  { %612 = vst [vmem:[#allocation7 + $0x188] sm:$0xff] %v377_v51 }
 0x153   :  { %v381_v53 = vpop.f32.mrf.mxu0  ;;  %v549_v54 = vpop.f32.mrf.mxu1 }
 0x154   :  { %614 = vst [vmem:[#allocation7 + $0x198] sm:$0xff] %v381_v53  ;;  %616 = vst [vmem:[#allocation7 + $0x1a8] sm:$0xff] %v549_v54 }
 0x155   :  { %v383_v55 = vpop.f32.mrf.mxu0  ;;  %v551_v56 = vpop.f32.mrf.mxu1 }
 0x156   :  { %615 = vst [vmem:[#allocation7 + $0x1a0] sm:$0xff] %v383_v55 }
 0x157   :  { %v387_v57 = vpop.f32.mrf.mxu0  ;;  %v554_v58 = vpop.f32.mrf.mxu1 }
 0x158   :  { %617 = vst [vmem:[#allocation7 + $0x1b0] sm:$0xff] %v387_v57  ;;  %619 = vst [vmem:[#allocation7 + $0x1c0] sm:$0xff] %v554_v58 }
 0x159   :  { %v389_v59 = vpop.f32.mrf.mxu0  ;;  %v556_v60 = vpop.f32.mrf.mxu1 }
 0x15a   :  { %618 = vst [vmem:[#allocation7 + $0x1b8] sm:$0xff] %v389_v59 }
 0x15b   :  { %v393_v61 = vpop.f32.mrf.mxu0  ;;  %v559_v62 = vpop.f32.mrf.mxu1 }
 0x15c   :  { %620 = vst [vmem:[#allocation7 + $0x1c8] sm:$0xff] %v393_v61  ;;  %622 = vst [vmem:[#allocation7 + $0x1d8] sm:$0xff] %v559_v62 }
 0x15d   :  { %v395_v63 = vpop.f32.mrf.mxu0  ;;  %v561_v1 = vpop.f32.mrf.mxu1 }
 0x15e   :  { %621 = vst [vmem:[#allocation7 + $0x1d0] sm:$0xff] %v395_v63 }
 0x15f   :  { %740 = shalt.err (!%p737_p0)
}
 0x160   :  { %634 = dma.vmem_to_hbm [thread:$0]  %s629_s1, 7680, %s859_s2, [#allocation4], %s759_s19, %s759_s19, %s760_s20  }
 0x161   :  { %753 = dma.done.wait [#allocation4], 7680  }
 0x162   :  { %754 = vsyncadd [#allocation4], 4294959616 }
 0x163   :  { %638 = vsyncpa [#allocation3], 1 }
 0x164   :  { %639 = vsyncpa [#allocation6], 1 }
 0x165   :  { %640 = vsyncpa [#allocation4], 1 }

</bundles_post_ra>
